<compile_context>
chip_gen: v5e
topology: v5e:2x2
jax: 0.10.0
libtpu: 0.0.40
codegen_flags: <defaults>
</compile_context>

<pallas_src>
import functools

import jax
import jax.numpy as jnp
from jax import lax
from jax.experimental import pallas as pl
from jax.experimental.pallas import tpu as pltpu

# ---------------- config (small, deterministic synthetic model) ----------------
CLASSES = ('__background__', 'car', 'person', 'dog')
N_CLASSES = len(CLASSES)            # 4
CLASS_AGNOSTIC = True
BOX_NUM_CLASSES = 1 if CLASS_AGNOSTIC else N_CLASSES
POOLING_SIZE = 3                    # cfg.POOLING_SIZE (small for demo)
FEAT_STRIDE = 16
SPATIAL_SCALE = 1.0 / 16.0
DOUT_BASE = 32                      # dout_base_model
CONV_NEW = 32                       # RCNN_conv_new output channels
RPN_HIDDEN = 16
ANCHOR_SIZES = (32.0, 64.0, 128.0)
NUM_ANCHORS = len(ANCHOR_SIZES)
POST_NMS_TOP_N = 8                  # rois per image

_VMEM_LIMIT = 32 * 1024 * 1024      # safe on v5e/v6e (128 MiB) and v7x (64 MiB)


# ------------------------------ tiling helpers ---------------------------------
def _round_up(x, m):
    return ((x + m - 1) // m) * m


def _tile_rows(x):
    """Pick an M tile (<=256 rows, multiple of 8) and zero-pad rows to it."""
    M = x.shape[0]
    tm = 256 if M > 256 else max(8, _round_up(M, 8))
    Mp = _round_up(M, tm)
    if Mp != M:
        x = jnp.pad(x, ((0, Mp - M), (0, 0)))
    return x, tm, Mp


# ---------------------------- Pallas kernels ------------------------------------
def _mm_kernel(x_ref, w_ref, b_ref, o_ref, *, relu):
    acc = jnp.dot(x_ref[...], w_ref[...], preferred_element_type=jnp.float32)
    acc = acc + b_ref[...]
    if relu:
        acc = jnp.maximum(acc, 0.0)
    o_ref[...] = acc.astype(o_ref.dtype)


def matmul_bias_act(x, w, b, relu=False, out_dtype=jnp.float32):
    """(M, K) @ (K, N) + b, optional ReLU.  M-tiled, bf16 MXU, f32 accumulate."""
    M, K = x.shape
    N = w.shape[1]
    xp, tm, Mp = _tile_rows(x)
    out = pl.pallas_call(
        functools.partial(_mm_kernel, relu=relu),
        grid=(Mp // tm,),
        in_specs=[pl.BlockSpec((tm, K), lambda i: (i, 0)),
                  pl.BlockSpec((K, N), lambda i: (0, 0)),
                  pl.BlockSpec((1, N), lambda i: (0, 0))],
        out_specs=pl.BlockSpec((tm, N), lambda i: (i, 0)),
        out_shape=jax.ShapeDtypeStruct((Mp, N), out_dtype),
        compiler_params=pltpu.CompilerParams(
            dimension_semantics=("parallel",),
            vmem_limit_bytes=_VMEM_LIMIT),
    )(xp.astype(jnp.bfloat16), w.astype(jnp.bfloat16),
      b.reshape(1, N).astype(jnp.float32))
    return out[:M]


def _mm2_kernel(x_ref, w1_ref, b1_ref, w2_ref, b2_ref, o_ref, *, relu1):
    """Fused two-stage MLP: o = (relu(x@w1+b1)) @ w2 + b2.  Hidden never
    leaves VMEM/registers."""
    h = jnp.dot(x_ref[...], w1_ref[...], preferred_element_type=jnp.float32)
    h = h + b1_ref[...]
    if relu1:
        h = jnp.maximum(h, 0.0)
    o = jnp.dot(h.astype(jnp.bfloat16), w2_ref[...],
                preferred_element_type=jnp.float32)
    o = o + b2_ref[...]
    o_ref[...] = o.astype(o_ref.dtype)


def fused_mlp(x, w1, b1, w2, b2, relu1=True, out_dtype=jnp.float32):
    M, K = x.shape
    H = w1.shape[1]
    N = w2.shape[1]
    xp, tm, Mp = _tile_rows(x)
    out = pl.pallas_call(
        functools.partial(_mm2_kernel, relu1=relu1),
        grid=(Mp // tm,),
        in_specs=[pl.BlockSpec((tm, K), lambda i: (i, 0)),
                  pl.BlockSpec((K, H), lambda i: (0, 0)),
                  pl.BlockSpec((1, H), lambda i: (0, 0)),
                  pl.BlockSpec((H, N), lambda i: (0, 0)),
                  pl.BlockSpec((1, N), lambda i: (0, 0))],
        out_specs=pl.BlockSpec((tm, N), lambda i: (i, 0)),
        out_shape=jax.ShapeDtypeStruct((Mp, N), out_dtype),
        compiler_params=pltpu.CompilerParams(
            dimension_semantics=("parallel",),
            vmem_limit_bytes=_VMEM_LIMIT),
    )(xp.astype(jnp.bfloat16), w1.astype(jnp.bfloat16),
      b1.reshape(1, H).astype(jnp.float32),
      w2.astype(jnp.bfloat16), b2.reshape(1, N).astype(jnp.float32))
    return out[:M]


def _psroi_softmax_kernel(rois_ref, feat_ref, cls_ref, box_ref, *,
                          R, K, NCLS, NBOX, Hf, Wf, scale):
    """Fused position-sensitive ROI pooling (R-FCN/Caffe semantics) on the
    concatenated [cls | bbox] feature maps + AvgPool2d(K,K) vote averaging +
    class softmax.  One grid step = one image; all R rois handled as a batch:
    per (ph,pw) bin one (R,HW) mask matmul against the (HW,OD) feature slab."""
    HW = Hf * Wf
    rois = rois_ref[0]                                   # (R, 5)
    x1 = rois[:, 1:2]
    y1 = rois[:, 2:3]
    x2 = rois[:, 3:4]
    y2 = rois[:, 4:5]
    roi_sw = jnp.floor(x1 + 0.5) * scale                 # (R, 1)
    roi_sh = jnp.floor(y1 + 0.5) * scale
    roi_ew = (jnp.floor(x2 + 0.5) + 1.0) * scale
    roi_eh = (jnp.floor(y2 + 0.5) + 1.0) * scale
    roi_w = jnp.maximum(roi_ew - roi_sw, 0.1)
    roi_h = jnp.maximum(roi_eh - roi_sh, 0.1)
    bin_w = roi_w / K
    bin_h = roi_h / K

    ii = lax.broadcasted_iota(jnp.int32, (1, HW), 1)
    hh = (ii // Wf).astype(jnp.float32)                  # (1, HW)
    ww = (ii % Wf).astype(jnp.float32)

    acc = jnp.zeros((R, NCLS + NBOX), jnp.float32)
    for ph in range(K):
        for pw in range(K):
            hstart = jnp.clip(jnp.floor(ph * bin_h + roi_sh), 0.0, float(Hf))
            hend = jnp.clip(jnp.ceil((ph + 1) * bin_h + roi_sh), 0.0, float(Hf))
            wstart = jnp.clip(jnp.floor(pw * bin_w + roi_sw), 0.0, float(Wf))
            wend = jnp.clip(jnp.ceil((pw + 1) * bin_w + roi_sw), 0.0, float(Wf))
            is_empty = jnp.logical_or(hend <= hstart, wend <= wstart)   # (R,1)
            mask = ((hh >= hstart) & (hh < hend) &
                    (ww >= wstart) & (ww < wend)).astype(jnp.float32)   # (R,HW)
            bin_area = jnp.maximum((hend - hstart) * (wend - wstart), 1.0)
            ch = feat_ref[0, ph * K + pw]                               # (HW,OD)
            s = jnp.dot(mask, ch, preferred_element_type=jnp.float32)   # (R,OD)
            acc = acc + jnp.where(is_empty, 0.0, s / bin_area)

    pooled = acc * (1.0 / (K * K))          # AvgPool2d(K,K) over the K*K bins
    cls_raw = pooled[:, :NCLS]
    m = jnp.max(cls_raw, axis=-1, keepdims=True)
    e = jnp.exp(cls_raw - m)
    cls_ref[...] = e / jnp.sum(e, axis=-1, keepdims=True)
    box_ref[...] = pooled[:, NCLS:]


def _ps_layout(feat_flat, B, Hf, Wf, od, k):
    """(B*Hf*Wf, od*k*k) with channel = (c*k+ph)*k+pw  ->  (B, k*k, HW, od)."""
    f = feat_flat.reshape(B, Hf, Wf, od, k, k)
    f = jnp.transpose(f, (0, 4, 5, 1, 2, 3)).reshape(B, k * k, Hf * Wf, od)
    return f


def ps_roi_pool_avg_softmax(feat, rois, n_cls, n_box, k, Hf, Wf, scale):
    """feat: (B, k*k, Hf*Wf, n_cls+n_box), rois: (B, R, 5).
       Returns (cls_prob (B*R, n_cls), bbox_pred (B*R, n_box))."""
    B = feat.shape[0]
    R = rois.shape[1]
    HW = Hf * Wf
    OD = n_cls + n_box
    kern = functools.partial(_psroi_softmax_kernel, R=R, K=k, NCLS=n_cls,
                             NBOX=n_box, Hf=Hf, Wf=Wf, scale=scale)
    return pl.pallas_call(
        kern,
        grid=(B,),
        in_specs=[pl.BlockSpec((1, R, 5), lambda b: (b, 0, 0)),
                  pl.BlockSpec((1, k * k, HW, OD), lambda b: (b, 0, 0, 0))],
        out_specs=[pl.BlockSpec((R, n_cls), lambda b: (b, 0)),
                   pl.BlockSpec((R, n_box), lambda b: (b, 0))],
        out_shape=(jax.ShapeDtypeStruct((B * R, n_cls), jnp.float32),
                   jax.ShapeDtypeStruct((B * R, n_box), jnp.float32)),
        compiler_params=pltpu.CompilerParams(
            dimension_semantics=("parallel",),
            vmem_limit_bytes=_VMEM_LIMIT),
    )(rois.astype(jnp.float32), feat.astype(jnp.float32))


# ------------------------------- glue -------------------------------------------
def im2col_3x3(x):
    # TODO(synk): replace with shifted-window accumulation inside the RPN kernel
    # to avoid the 9x inflated intermediate at real image sizes; kept bf16 here.
    B, H, W, C = x.shape
    xp = jnp.pad(x, ((0, 0), (1, 1), (1, 1), (0, 0)))
    cols = [xp[:, dh:dh + H, dw:dw + W, :] for dh in range(3) for dw in range(3)]
    return jnp.concatenate(cols, axis=-1)                  # (B, H, W, 9C)


def rpn_proposals(rpn_cls, rpn_bbox, im_info, top_n):
    """Simplified RPN proposal layer: anchor decode + clip + top-K scores."""
    B, Hf, Wf, _ = rpn_cls.shape
    A = NUM_ANCHORS
    bg, fg = rpn_cls[..., :A], rpn_cls[..., A:]
    fg_prob = jax.nn.softmax(jnp.stack([bg, fg], axis=-1), axis=-1)[..., 1]
    ys, xs = jnp.meshgrid(jnp.arange(Hf, dtype=jnp.float32),
                          jnp.arange(Wf, dtype=jnp.float32), indexing='ij')
    cx = (xs + 0.5) * FEAT_STRIDE
    cy = (ys + 0.5) * FEAT_STRIDE
    aw = jnp.broadcast_to(jnp.asarray(ANCHOR_SIZES, jnp.float32), (Hf, Wf, A))
    ah = aw
    deltas = rpn_bbox.reshape(B, Hf, Wf, A, 4)
    dx, dy, dw, dh = deltas[..., 0], deltas[..., 1], deltas[..., 2], deltas[..., 3]
    pcx = cx[None, :, :, None] + dx * aw[None]
    pcy = cy[None, :, :, None] + dy * ah[None]
    pw_ = aw[None] * jnp.exp(dw)
    ph_ = ah[None] * jnp.exp(dh)
    x1, y1 = pcx - 0.5 * pw_, pcy - 0.5 * ph_
    x2, y2 = pcx + 0.5 * pw_, pcy + 0.5 * ph_
    imh = im_info[:, 0].reshape(B, 1, 1, 1)
    imw = im_info[:, 1].reshape(B, 1, 1, 1)
    x1 = jnp.clip(x1, 0.0, imw - 1.0)
    x2 = jnp.clip(x2, 0.0, imw - 1.0)
    y1 = jnp.clip(y1, 0.0, imh - 1.0)
    y2 = jnp.clip(y2, 0.0, imh - 1.0)
    boxes = jnp.stack([x1, y1, x2, y2], axis=-1).reshape(B, Hf * Wf * A, 4)
    scores = fg_prob.reshape(B, Hf * Wf * A)
    # TODO(synk): NMS in the RPN proposal layer has no clean Pallas equivalent;
    # proposals are selected by top-K objectness only.
    _, idx = lax.top_k(scores, top_n)
    sel = jnp.take_along_axis(boxes, idx[..., None], axis=1)
    batch_ix = jnp.broadcast_to(
        jnp.arange(B, dtype=jnp.float32).reshape(B, 1, 1), (B, top_n, 1))
    return jnp.concatenate([batch_ix, sel], axis=-1)       # (B, top_n, 5)


def init_params(key):
    ks = jax.random.split(key, 7)

    def nrm(k, shape, std):
        return std * jax.random.normal(k, shape, jnp.float32)

    p = {}
    # synthetic RCNN_base (backbone is defined in subclasses of _RFCN)
    p['stem_w'] = nrm(ks[0], (FEAT_STRIDE * FEAT_STRIDE * 3, DOUT_BASE), 0.01)
    p['stem_b'] = jnp.zeros((DOUT_BASE,), jnp.float32)
    # RPN (normal_init std=0.01, bias 0)
    p['rpn_conv_w'] = nrm(ks[1], (9 * DOUT_BASE, RPN_HIDDEN), 0.01)
    p['rpn_conv_b'] = jnp.zeros((RPN_HIDDEN,), jnp.float32)
    p['rpn_cls_w'] = nrm(ks[2], (RPN_HIDDEN, 2 * NUM_ANCHORS), 0.01)
    p['rpn_cls_b'] = jnp.zeros((2 * NUM_ANCHORS,), jnp.float32)
    p['rpn_bbox_w'] = nrm(ks[3], (RPN_HIDDEN, 4 * NUM_ANCHORS), 0.01)
    p['rpn_bbox_b'] = jnp.zeros((4 * NUM_ANCHORS,), jnp.float32)
    # RCNN_conv_new / cls_base (std 0.01) / bbox_base (std 0.001)
    p['conv_new_w'] = nrm(ks[4], (DOUT_BASE, CONV_NEW), 0.01)
    p['conv_new_b'] = jnp.zeros((CONV_NEW,), jnp.float32)
    p['cls_base_w'] = nrm(ks[5], (CONV_NEW, N_CLASSES * POOLING_SIZE ** 2), 0.01)
    p['cls_base_b'] = jnp.zeros((N_CLASSES * POOLING_SIZE ** 2,), jnp.float32)
    p['bbox_base_w'] = nrm(ks[6], (CONV_NEW, 4 * BOX_NUM_CLASSES * POOLING_SIZE ** 2), 0.001)
    p['bbox_base_b'] = jnp.zeros((4 * BOX_NUM_CLASSES * POOLING_SIZE ** 2,), jnp.float32)
    return p


def rfcn_forward(params, im_data, im_info, gt_boxes, num_boxes):
    """Eval-mode forward of _RFCN.  im_data is NCHW like PyTorch."""
    del gt_boxes, num_boxes  # only used by the RPN/training branch
    B, Cin, H, W = im_data.shape
    Hf, Wf = H // FEAT_STRIDE, W // FEAT_STRIDE
    x = jnp.transpose(im_data, (0, 2, 3, 1)).astype(jnp.float32)   # NHWC

    # base_feat = RCNN_base(im_data)  (synthetic stride-16 backbone)
    patches = x.reshape(B, Hf, FEAT_STRIDE, Wf, FEAT_STRIDE, Cin)
    patches = jnp.transpose(patches, (0, 1, 3, 2, 4, 5)).reshape(
        B * Hf * Wf, FEAT_STRIDE * FEAT_STRIDE * Cin)
    base_flat = matmul_bias_act(patches, params['stem_w'], params['stem_b'],
                                relu=True, out_dtype=jnp.bfloat16)
    base_nhwc = base_flat.reshape(B, Hf, Wf, DOUT_BASE)

    # rois, rpn_loss_cls, rpn_loss_bbox = RCNN_rpn(base_feat, im_info, ...)
    # Fused: 3x3 RPN conv -> ReLU -> [cls | bbox] heads in ONE Pallas kernel.
    cols = im2col_3x3(base_nhwc).reshape(B * Hf * Wf, 9 * DOUT_BASE)
    rpn_head_w = jnp.concatenate([params['rpn_cls_w'], params['rpn_bbox_w']], axis=1)
    rpn_head_b = jnp.concatenate([params['rpn_cls_b'], params['rpn_bbox_b']], axis=0)
    rpn_out = fused_mlp(cols, params['rpn_conv_w'], params['rpn_conv_b'],
                        rpn_head_w, rpn_head_b, relu1=True)
    rpn_cls = rpn_out[:, :2 * NUM_ANCHORS]
    rpn_bbox = rpn_out[:, 2 * NUM_ANCHORS:]
    rois = rpn_proposals(rpn_cls.reshape(B, Hf, Wf, 2 * NUM_ANCHORS),
                         rpn_bbox.reshape(B, Hf, Wf, 4 * NUM_ANCHORS),
                         im_info, POST_NMS_TOP_N)
    rpn_loss_cls = jnp.float32(0.0)
    rpn_loss_bbox = jnp.float32(0.0)

    # base_feat = RCNN_conv_new(base_feat); cls_feat / bbox_base heads.
    # Fused: 1x1 conv_new -> ReLU -> [cls_base | bbox_base] in ONE kernel.
    K2 = POOLING_SIZE * POOLING_SIZE
    base_head_w = jnp.concatenate([params['cls_base_w'], params['bbox_base_w']], axis=1)
    base_head_b = jnp.concatenate([params['cls_base_b'], params['bbox_base_b']], axis=0)
    head_out = fused_mlp(base_flat, params['conv_new_w'], params['conv_new_b'],
                         base_head_w, base_head_b, relu1=True)
    cls_feat_flat = head_out[:, :N_CLASSES * K2]
    bbox_feat_flat = head_out[:, N_CLASSES * K2:]

    # npu_ps_roi_pooling + AvgPool2d(POOLING_SIZE) + squeeze + softmax, fused,
    # with cls and bbox maps concatenated along the output-dim axis.
    feat_cls = _ps_layout(cls_feat_flat, B, Hf, Wf, N_CLASSES, POOLING_SIZE)
    feat_box = _ps_layout(bbox_feat_flat, B, Hf, Wf, 4 * BOX_NUM_CLASSES, POOLING_SIZE)
    feat_all = jnp.concatenate([feat_cls, feat_box], axis=-1)   # (B, k*k, HW, OD)
    cls_prob, bbox_pred = ps_roi_pool_avg_softmax(
        feat_all, rois, N_CLASSES, 4 * BOX_NUM_CLASSES,
        POOLING_SIZE, Hf, Wf, SPATIAL_SCALE)

    R = rois.shape[1]
    cls_prob = cls_prob.reshape(B, R, -1)
    bbox_pred = bbox_pred.reshape(B, R, -1)
    # TODO(synk): training branch (_ProposalTargetLayer, cross_entropy /
    # smooth-L1 / OHEM losses, per-class bbox gather) not implemented; eval path
    # returns zero losses and rois_label=None exactly like the PyTorch module.
    RCNN_loss_cls = jnp.float32(0.0)
    RCNN_loss_bbox = jnp.float32(0.0)
    rois_label = None
    return (rois, cls_prob, bbox_pred, rpn_loss_cls, rpn_loss_bbox,
            RCNN_loss_cls, RCNN_loss_bbox, rois_label)


if __name__ == "__main__":
    key = jax.random.PRNGKey(0)
    k_im, k_par = jax.random.split(key)
    B, H, W = 2, 64, 64
    im_data = jax.random.normal(k_im, (B, 3, H, W), jnp.float32)      # NCHW
    im_info = jnp.array([[H, W, 1.0], [H, W, 1.0]], jnp.float32)      # (B, 3)
    gt_boxes = jnp.zeros((B, 5, 5), jnp.float32)
    num_boxes = jnp.zeros((B,), jnp.int32)
    params = init_params(k_par)

    out = rfcn_forward(params, im_data, im_info, gt_boxes, num_boxes)
    rois, cls_prob, bbox_pred = out[0], out[1], out[2]
    jax.block_until_ready((rois, cls_prob, bbox_pred))
    assert rois.shape == (B, POST_NMS_TOP_N, 5)
    assert cls_prob.shape == (B, POST_NMS_TOP_N, N_CLASSES)
    assert bbox_pred.shape == (B, POST_NMS_TOP_N, 4 * BOX_NUM_CLASSES)
    assert bool(jnp.all(jnp.isfinite(cls_prob))) and bool(jnp.all(jnp.isfinite(bbox_pred)))
    print("KERNEL_OK")
</pallas_src>

<mosaic_0001>
module attributes {stable_mosaic.version = 11 : i64} {
  func.func @_mm_kernel(%arg0: i32, %arg1: memref<32x768xbf16, #tpu.memory_space<vmem>>, %arg2: memref<768x32xbf16, #tpu.memory_space<vmem>>, %arg3: memref<1x32xf32, #tpu.memory_space<vmem>>, %arg4: memref<32x32xbf16, #tpu.memory_space<vmem>>) attributes {dimension_semantics = [#tpu.dimension_semantics<parallel>], iteration_bounds = array<i64: 1>, scalar_prefetch = 0 : i64, scratch_operands = 0 : i64, tpu.core_type = #tpu.core_type<tc>, window_params = [{transform_indices = @transform_0, window_bounds = array<i64: 32, 768>}, {pipeline_mode = #tpu.pipeline_mode<synchronous>, transform_indices = @transform_1, window_bounds = array<i64: 768, 32>}, {pipeline_mode = #tpu.pipeline_mode<synchronous>, transform_indices = @transform_2, window_bounds = array<i64: 1, 32>}, {transform_indices = @transform_3, window_bounds = array<i64: 32, 32>}]} {
    %c0 = arith.constant 0 : index
    %c0_0 = arith.constant 0 : index
    %0 = vector.load %arg1[%c0, %c0_0] : memref<32x768xbf16, #tpu.memory_space<vmem>>, vector<32x768xbf16>
    %c0_1 = arith.constant 0 : index
    %c0_2 = arith.constant 0 : index
    %1 = vector.load %arg2[%c0_1, %c0_2] : memref<768x32xbf16, #tpu.memory_space<vmem>>, vector<768x32xbf16>
    %cst = arith.constant dense<0.000000e+00> : vector<32x32xf32>
    %2 = tpu.matmul %0, %1, %cst {dimension_numbers = #tpu.dot_dimension_numbers<[1], [0], [0], [1], [0, 0, 1, 1], [], []>} : vector<32x768xbf16>, vector<768x32xbf16>, vector<32x32xf32> -> vector<32x32xf32>
    %c0_3 = arith.constant 0 : index
    %c0_4 = arith.constant 0 : index
    %3 = vector.load %arg3[%c0_3, %c0_4] : memref<1x32xf32, #tpu.memory_space<vmem>>, vector<1x32xf32>
    %4 = vector.broadcast %3 : vector<1x32xf32> to vector<32x32xf32>
    %5 = arith.addf %2, %4 : vector<32x32xf32>
    %cst_5 = arith.constant 0.000000e+00 : f32
    %6 = vector.broadcast %cst_5 : f32 to vector<32x32xf32>
    %7 = arith.maximumf %5, %6 : vector<32x32xf32>
    %8 = arith.truncf %7 : vector<32x32xf32> to vector<32x32xbf16>
    %c0_6 = arith.constant 0 : index
    %c0_7 = arith.constant 0 : index
    %9 = vector.load %arg4[%c0_6, %c0_7] : memref<32x32xbf16, #tpu.memory_space<vmem>>, vector<32x32xbf16>
    tpu.vector_store %arg4[%c0_6, %c0_7], %8 {strides = array<i32>} : memref<32x32xbf16, #tpu.memory_space<vmem>>, vector<32x32xbf16>,
    return
  }
  func.func @transform_0(%arg0: i32) -> (i32, i32) {
    %c0_i32 = arith.constant 0 : i32
    %c0_i32_0 = arith.constant 0 : i32
    return %arg0, %c0_i32 : i32, i32
  }
  func.func @transform_1(%arg0: i32) -> (i32, i32) {
    %c0_i32 = arith.constant 0 : i32
    %c0_i32_0 = arith.constant 0 : i32
    %c0_i32_1 = arith.constant 0 : i32
    return %c0_i32, %c0_i32_0 : i32, i32
  }
  func.func @transform_2(%arg0: i32) -> (i32, i32) {
    %c0_i32 = arith.constant 0 : i32
    %c0_i32_0 = arith.constant 0 : i32
    %c0_i32_1 = arith.constant 0 : i32
    return %c0_i32, %c0_i32_0 : i32, i32
  }
  func.func @transform_3(%arg0: i32) -> (i32, i32) {
    %c0_i32 = arith.constant 0 : i32
    %c0_i32_0 = arith.constant 0 : i32
    return %arg0, %c0_i32 : i32, i32
  }
}

</mosaic_0001>

<bundles_post_ra>
// kernel: tpu_custom_call.1
= control target key start
LH: loop header
LB: loop body
LE: loop exit
PB: predicated region body
PF: predicated region fallthrough
CT: control target
= control target key end

     0   :  { %s1215_s0 = inlined_call_operand.vmem [shape: bf16[32,768], index: 0, kind: input, shape index: {}]   ;;  %s1216_s1 = inlined_call_operand.vmem [shape: bf16[768,32], index: 1, kind: input, shape index: {}]   ;;  %s1217_s2 = inlined_call_operand.vmem [shape: f32[1,32], index: 2, kind: input, shape index: {}]   ;;  %s1218_s3 = inlined_call_operand.hbm [shape: bf16[32,32], index: 3, kind: output, shape index: {}]  }
   0x1   :  { %v879_v0 = vld [vmem:[%s1216_s1 + $0x38] sm:$0xff]  ;;  %v878_v4 = vld [vmem:[%s1216_s1 + $0x30] sm:$0xff]  ;;  %v877_v8 = vld [vmem:[%s1216_s1 + $0x28] sm:$0xff] }
   0x2   :  { %v887_v1 = vld [vmem:[%s1216_s1 + $0x78] sm:$0xff]  ;;  %475 = vmatpush.bf16.msra.mxu0 %v879_v0  ;;  %v886_v5 = vld [vmem:[%s1216_s1 + $0x70] sm:$0xff]  ;;  %v885_v9 = vld [vmem:[%s1216_s1 + $0x68] sm:$0xff] }
   0x3   :  { %v895_v2 = vld [vmem:[%s1216_s1 + $0xb8] sm:$0xff]  ;;  %494 = vmatpush.bf16.msra.mxu1 %v887_v1  ;;  %v894_v6 = vld [vmem:[%s1216_s1 + $0xb0] sm:$0xff]  ;;  %v893_v10 = vld [vmem:[%s1216_s1 + $0xa8] sm:$0xff] }
   0x4   :  { %v903_v3 = vld [vmem:[%s1216_s1 + $0xf8] sm:$0xff]  ;;  %513 = vmatpush.bf16.msra.mxu2 %v895_v2  ;;  %v902_v7 = vld [vmem:[%s1216_s1 + $0xf0] sm:$0xff]  ;;  %v901_v11 = vld [vmem:[%s1216_s1 + $0xe8] sm:$0xff] }
   0x5   :  { %532 = vmatpush.bf16.msra.mxu3 %v903_v3  ;;  %v876_v12 = vld [vmem:[%s1216_s1 + $0x20] sm:$0xff]  ;;  %v875_v16 = vld [vmem:[%s1216_s1 + $0x18] sm:$0xff]  ;;  %v874_v20 = vld [vmem:[%s1216_s1 + $0x10] sm:$0xff] }
   0x6   :  { %476 = vmatpush.bf16.msra.mxu0 %v878_v4  ;;  %v884_v13 = vld [vmem:[%s1216_s1 + $0x60] sm:$0xff]  ;;  %v883_v17 = vld [vmem:[%s1216_s1 + $0x58] sm:$0xff]  ;;  %v882_v21 = vld [vmem:[%s1216_s1 + $0x50] sm:$0xff] }
   0x7   :  { %495 = vmatpush.bf16.msra.mxu1 %v886_v5  ;;  %v892_v14 = vld [vmem:[%s1216_s1 + $0xa0] sm:$0xff]  ;;  %v891_v18 = vld [vmem:[%s1216_s1 + $0x98] sm:$0xff]  ;;  %v890_v22 = vld [vmem:[%s1216_s1 + $0x90] sm:$0xff] }
   0x8   :  { %514 = vmatpush.bf16.msra.mxu2 %v894_v6  ;;  %v900_v15 = vld [vmem:[%s1216_s1 + $0xe0] sm:$0xff]  ;;  %v899_v19 = vld [vmem:[%s1216_s1 + $0xd8] sm:$0xff]  ;;  %v898_v23 = vld [vmem:[%s1216_s1 + $0xd0] sm:$0xff] }
   0x9   :  { %533 = vmatpush.bf16.msra.mxu3 %v902_v7 }
   0xa   :  { %477 = vmatpush.bf16.msra.mxu0 %v877_v8 }
   0xb   :  { %496 = vmatpush.bf16.msra.mxu1 %v885_v9 }
   0xc   :  { %515 = vmatpush.bf16.msra.mxu2 %v893_v10 }
   0xd   :  { %534 = vmatpush.bf16.msra.mxu3 %v901_v11 }
   0xe   :  { %478 = vmatpush.bf16.msra.mxu0 %v876_v12 }
   0xf   :  { %497 = vmatpush.bf16.msra.mxu1 %v884_v13 }
  0x10   :  { %516 = vmatpush.bf16.msra.mxu2 %v892_v14 }
  0x11   :  { %535 = vmatpush.bf16.msra.mxu3 %v900_v15 }
  0x12   :  { %479 = vmatpush.bf16.msra.mxu0 %v875_v16 }
  0x13   :  { %498 = vmatpush.bf16.msra.mxu1 %v883_v17 }
  0x14   :  { %517 = vmatpush.bf16.msra.mxu2 %v891_v18 }
  0x15   :  { %536 = vmatpush.bf16.msra.mxu3 %v899_v19 }
  0x16   :  { %8 = vsyncpa [#allocation3], 0  ;;  %480 = vmatpush.bf16.msra.mxu0 %v874_v20  ;;  %v873_v24 = vld [vmem:[%s1216_s1 + $0x8] sm:$0xff]  ;;  %v872_v28 = vld [vmem:[%s1216_s1] sm:$0xff]  ;;  %vm597_vm0 = vcmask 257024   ;;  %s608_s24 = sshll.u32 %s1218_s3, 4  ;;  %s609_s24 = int_to_ptr.hbm [resolvable:$true] %s608_s24 }
  0x17   :  { %499 = vmatpush.bf16.msra.mxu1 %v882_v21  ;;  %v881_v25 = vld [vmem:[%s1216_s1 + $0x48] sm:$0xff]  ;;  %v880_v29 = vld [vmem:[%s1216_s1 + $0x40] sm:$0xff]  ;;  %v863_v33 = vld [vmem:[%s1215_s0 + $0x14] sm:$0xf0]  ;;  %s967_s25 = smov 64   ;;  %s968_s26 = smov 4  }
  0x18   :  { %518 = vmatpush.bf16.msra.mxu2 %v890_v22  ;;  %v889_v26 = vld [vmem:[%s1216_s1 + $0x88] sm:$0xff]  ;;  %v888_v30 = vld [vmem:[%s1216_s1 + $0x80] sm:$0xff]  ;;  %v624_v35 = vld [vmem:[%s1215_s0 + $0x18] sm:$0xf0] }
  0x19   :  { %537 = vmatpush.bf16.msra.mxu3 %v898_v23  ;;  %v897_v27 = vld [vmem:[%s1216_s1 + $0xc8] sm:$0xff]  ;;  %v896_v31 = vld [vmem:[%s1216_s1 + $0xc0] sm:$0xff]  ;;  %v911_v40 = vld [vmem:[%s1216_s1 + $0x138] sm:$0xff] }
  0x1a   :  { %v622_v32 = vld [vmem:[%s1215_s0] sm:$0xf]  ;;  %481 = vmatpush.bf16.msra.mxu0 %v873_v24  ;;  %v860_v34 = vld [vmem:[%s1215_s0 + $0x4] sm:$0xf]  ;;  %v630_v36 = vld [vmem:[%s1215_s0 + $0x8] sm:$0xf] }
  0x1b   :  { %500 = vmatpush.bf16.msra.mxu1 %v881_v25  ;;  %v864_v37 = vld [vmem:[%s1215_s0 + $0x1c] sm:$0xf0]  ;;  %v861_v38 = vld [vmem:[%s1215_s0 + $0xc] sm:$0xf]  ;;  %v632_v39 = vld [vmem:[%s1215_s0 + $0x20] sm:$0xf0]  ;;  %v623_v41 = vor.u32 %v863_v33, %v622_v32  ;;  %v627_v42 = vor.u32 %v860_v34, %v624_v35 }
  0x1c   :  { %519 = vmatpush.bf16.msra.mxu2 %v889_v26  ;;  %v631_v43 = vor.u32 %v864_v37, %v630_v36  ;;  %v635_v44 = vor.u32 %v861_v38, %v632_v39  ;;  %v919_v45 = vld [vmem:[%s1216_s1 + $0x178] sm:$0xff]  ;;  %v910_v46 = vld [vmem:[%s1216_s1 + $0x130] sm:$0xff]  ;;  %v909_v48 = vld [vmem:[%s1216_s1 + $0x128] sm:$0xff] }
  0x1d   :  { %538 = vmatpush.bf16.msra.mxu3 %v897_v27  ;;  %v918_v47 = vld [vmem:[%s1216_s1 + $0x170] sm:$0xff]  ;;  %v917_v49 = vld [vmem:[%s1216_s1 + $0x168] sm:$0xff]  ;;  %v908_v50 = vld [vmem:[%s1216_s1 + $0x120] sm:$0xff] }
  0x1e   :  { %482 = vmatpush.bf16.msra.mxu0 %v872_v28  ;;  %v916_v51 = vld [vmem:[%s1216_s1 + $0x160] sm:$0xff]  ;;  %v646_v52 = vld [vmem:[%s1215_s0 + $0x30] sm:$0xf]  ;;  %v869_v53 = vld [vmem:[%s1215_s0 + $0x44] sm:$0xf0] }
  0x1f   :  { %501 = vmatpush.bf16.msra.mxu1 %v880_v29  ;;  %v866_v54 = vld [vmem:[%s1215_s0 + $0x34] sm:$0xf]  ;;  %v648_v55 = vld [vmem:[%s1215_s0 + $0x48] sm:$0xf0]  ;;  %v654_v56 = vld [vmem:[%s1215_s0 + $0x38] sm:$0xf]  ;;  %v647_v61 = vor.u32 %v869_v53, %v646_v52 }
  0x20   :  { %520 = vmatpush.bf16.msra.mxu2 %v888_v30  ;;  %v870_v57 = vld [vmem:[%s1215_s0 + $0x4c] sm:$0xf0]  ;;  %v867_v58 = vld [vmem:[%s1215_s0 + $0x3c] sm:$0xf]  ;;  %v656_v59 = vld [vmem:[%s1215_s0 + $0x50] sm:$0xf0]  ;;  %v651_v62 = vor.u32 %v866_v54, %v648_v55 }
  0x21   :  { %539 = vmatpush.bf16.msra.mxu3 %v896_v31  ;;  %483 = vmatmul.bf16.vlgmr.msra.gmra.mxu0 %v623_v41  ;;  %v907_v60 = vld [vmem:[%s1216_s1 + $0x118] sm:$0xff]  ;;  %v655_v63 = vor.u32 %v870_v57, %v654_v56  ;;  %v659_v0 = vor.u32 %v867_v58, %v656_v59  ;;  %v906_v2 = vld [vmem:[%s1216_s1 + $0x110] sm:$0xff]  ;;  %v905_v4 = vld [vmem:[%s1216_s1 + $0x108] sm:$0xff] }
  0x22   :  { %551 = vmatpush.bf16.msrb.mxu0 %v911_v40  ;;  %502 = vmatmul.bf16.vlgmr.msra.gmra.mxu1 %v627_v42  ;;  %v915_v1 = vld [vmem:[%s1216_s1 + $0x158] sm:$0xff]  ;;  %v914_v3 = vld [vmem:[%s1216_s1 + $0x150] sm:$0xff]  ;;  %v913_v5 = vld [vmem:[%s1216_s1 + $0x148] sm:$0xff] }
  0x23   :  { %521 = vmatmul.bf16.vlgmr.msra.gmra.mxu2 %v631_v43  ;;  %570 = vmatpush.bf16.msrb.mxu1 %v919_v45  ;;  %v904_v6 = vld [vmem:[%s1216_s1 + $0x100] sm:$0xff]  ;;  %v638_v8 = vld [vmem:[%s1215_s0 + $0x10] sm:$0xf]  ;;  %v865_v9 = vld [vmem:[%s1215_s0 + $0x24] sm:$0xf0] }
  0x24   :  { %920 = vmatpush.bf16.msrb.mxu2 %v911_v40  ;;  %540 = vmatmul.bf16.vlgmr.msra.gmra.mxu3 %v635_v44  ;;  %v912_v7 = vld [vmem:[%s1216_s1 + $0x140] sm:$0xff]  ;;  %v871_v11 = vld [vmem:[%s1215_s0 + $0x54] sm:$0xf0]  ;;  %v862_v12 = vld [vmem:[%s1215_s0 + $0x14] sm:$0xf]  ;;  %v639_v16 = vor.u32 %v865_v9, %v638_v8 }
  0x25   :  { %928 = vmatpush.bf16.msrb.mxu3 %v919_v45  ;;  %v662_v10 = vld [vmem:[%s1215_s0 + $0x40] sm:$0xf]  ;;  %v640_v13 = vld [vmem:[%s1215_s0 + $0x28] sm:$0xf0]  ;;  %v868_v14 = vld [vmem:[%s1215_s0 + $0x44] sm:$0xf] }
  0x26   :  { %552 = vmatpush.bf16.msrb.mxu0 %v910_v46  ;;  %v664_v15 = vld [vmem:[%s1215_s0 + $0x58] sm:$0xf0]  ;;  %v663_v17 = vor.u32 %v871_v11, %v662_v10  ;;  %v643_v18 = vor.u32 %v862_v12, %v640_v13  ;;  %v939_v26 = vld [vmem:[%s1217_s2] ss:$0 sm:$0xff]  ;;  %s966_s0 = smov [#allocation2]  }
  0x27   :  { %571 = vmatpush.bf16.msrb.mxu1 %v918_v47  ;;  %v667_v19 = vor.u32 %v868_v14, %v664_v15  ;;  %s606_s2 = sshll.u32 %s966_s0, 4  ;;  %s607_s2 = int_to_ptr.vmem [resolvable:$true] %s606_s2 }
  0x28   :  { %921 = vmatpush.bf16.msrb.mxu2 %v910_v46 }
  0x29   :  { %929 = vmatpush.bf16.msrb.mxu3 %v918_v47 }
  0x2a   :  { %553 = vmatpush.bf16.msrb.mxu0 %v909_v48 }
  0x2b   :  { %572 = vmatpush.bf16.msrb.mxu1 %v917_v49 }
  0x2c   :  { %922 = vmatpush.bf16.msrb.mxu2 %v909_v48 }
  0x2d   :  { %930 = vmatpush.bf16.msrb.mxu3 %v917_v49 }
  0x2e   :  { %554 = vmatpush.bf16.msrb.mxu0 %v908_v50 }
  0x2f   :  { %573 = vmatpush.bf16.msrb.mxu1 %v916_v51 }
  0x30   :  { %923 = vmatpush.bf16.msrb.mxu2 %v908_v50 }
  0x31   :  { %931 = vmatpush.bf16.msrb.mxu3 %v916_v51  ;;  %488 = vmatmul.bf16.gmra.mxu0 %v647_v61 }
  0x32   :  { %555 = vmatpush.bf16.msrb.mxu0 %v907_v60  ;;  %507 = vmatmul.bf16.gmra.mxu1 %v651_v62 }
  0x33   :  { %526 = vmatmul.bf16.gmra.mxu2 %v655_v63  ;;  %574 = vmatpush.bf16.msrb.mxu1 %v915_v1 }
  0x34   :  { %924 = vmatpush.bf16.msrb.mxu2 %v907_v60  ;;  %545 = vmatmul.bf16.gmra.mxu3 %v659_v0 }
  0x35   :  { %932 = vmatpush.bf16.msrb.mxu3 %v915_v1 }
  0x36   :  { %556 = vmatpush.bf16.msrb.mxu0 %v906_v2 }
  0x37   :  { %575 = vmatpush.bf16.msrb.mxu1 %v914_v3 }
  0x38   :  { %925 = vmatpush.bf16.msrb.mxu2 %v906_v2 }
  0x39   :  { %933 = vmatpush.bf16.msrb.mxu3 %v914_v3 }
  0x3a   :  { %557 = vmatpush.bf16.msrb.mxu0 %v905_v4 }
  0x3b   :  { %576 = vmatpush.bf16.msrb.mxu1 %v913_v5 }
  0x3c   :  { %926 = vmatpush.bf16.msrb.mxu2 %v905_v4 }
  0x3d   :  { %934 = vmatpush.bf16.msrb.mxu3 %v913_v5 }
  0x3e   :  { %558 = vmatpush.bf16.msrb.mxu0 %v904_v6 }
  0x3f   :  { %577 = vmatpush.bf16.msrb.mxu1 %v912_v7 }
  0x40   :  { %927 = vmatpush.bf16.msrb.mxu2 %v904_v6 }
  0x41   :  { %935 = vmatpush.bf16.msrb.mxu3 %v912_v7  ;;  %559 = vmatmul.bf16.vlgmr.msrb.gmra.mxu0 %v639_v16 }
  0x42   :  { %578 = vmatmul.bf16.vlgmr.msrb.gmra.mxu1 %v643_v18 }
  0x43   :  { %564 = vmatmul.bf16.vlgmr.msrb.gmra.mxu2 %v663_v17 }
  0x44   :  { %583 = vmatmul.bf16.vlgmr.msrb.gmra.mxu3 %v667_v19 }
  0x9e   :  { %v484_v20 = vpop.f32.mrf.mxu0 }
  0x9f   :  { %v503_v21 = vpop.f32.mrf.mxu1  ;;  %v485_v31 = vadd.f32 %v939_v26, %v484_v20 }
  0xa1   :  { %v504_v32 = vadd.f32 %v503_v21, %v485_v31 }
  0xa6   :  { %v522_v22 = vpop.f32.mrf.mxu2  ;;  %v486_v24 = vpop.f32.mrf.mxu0 }
  0xa7   :  { %v541_v23 = vpop.f32.mrf.mxu3  ;;  %v505_v25 = vpop.f32.mrf.mxu1  ;;  %v523_v38 = vadd.f32 %v522_v22, %v504_v32  ;;  %v487_v39 = vadd.f32 %v939_v26, %v486_v24 }
  0xa9   :  { %v542_v41 = vadd.f32 %v541_v23, %v523_v38  ;;  %v506_v45 = vadd.f32 %v505_v25, %v487_v39 }
  0xae   :  { %v524_v27 = vpop.f32.mrf.mxu2  ;;  %v489_v29 = vpop.f32.mrf.mxu0 }
  0xaf   :  { %v543_v28 = vpop.f32.mrf.mxu3  ;;  %v508_v30 = vpop.f32.mrf.mxu1  ;;  %v490_v37 = vadd.f32 %v939_v26, %v489_v29  ;;  %v525_v49 = vadd.f32 %v524_v27, %v506_v45 }
  0xb1   :  { %v509_v40 = vadd.f32 %v508_v30, %v490_v37  ;;  %v544_v54 = vadd.f32 %v543_v28, %v525_v49 }
  0xb6   :  { %v527_v33 = vpop.f32.mrf.mxu2  ;;  %v491_v35 = vpop.f32.mrf.mxu0 }
  0xb7   :  { %v546_v34 = vpop.f32.mrf.mxu3  ;;  %v510_v36 = vpop.f32.mrf.mxu1  ;;  %v528_v48 = vadd.f32 %v527_v33, %v509_v40  ;;  %v492_v51 = vadd.f32 %v939_v26, %v491_v35 }
  0xb9   :  { %v547_v53 = vadd.f32 %v546_v34, %v528_v48  ;;  %v511_v57 = vadd.f32 %v510_v36, %v492_v51 }
  0xbe   :  { %v529_v42 = vpop.f32.mrf.mxu2  ;;  %v560_v44 = vpop.f32.mrf.mxu0 }
  0xbf   :  { %v548_v43 = vpop.f32.mrf.mxu3  ;;  %v561_v46 = vadd.f32 %v560_v44, %v542_v41  ;;  %v579_v47 = vpop.f32.mrf.mxu1  ;;  %v530_v62 = vadd.f32 %v529_v42, %v511_v57 }
  0xc1   :  { %v580_v50 = vadd.f32 %v579_v47, %v561_v46  ;;  %v549_v4 = vadd.f32 %v548_v43, %v530_v62 }
  0xc3   :  { %v589_v52 = vmax.f32 %v580_v50, 0.0 }
  0xc5   :  { %v593_v55 = vpack.c.bf16 %v589_v52, %v589_v52 }
  0xc6   :  { %v565_v56 = vpop.f32.mrf.mxu2  ;;  %v562_v60 = vpop.f32.mrf.mxu0 }
  0xc7   :  { %v566_v58 = vadd.f32 %v565_v56, %v547_v53  ;;  %v584_v59 = vpop.f32.mrf.mxu3  ;;  %598 = vst.msk [vmem:[#allocation2] sm:$0xf] %vm597_vm0, %v593_v55  ;;  %v563_v61 = vadd.f32 %v562_v60, %v544_v54  ;;  %v581_v0 = vpop.f32.mrf.mxu1 }
  0xc9   :  { %v585_v63 = vadd.f32 %v584_v59, %v566_v58  ;;  %v582_v1 = vadd.f32 %v581_v0, %v563_v61 }
  0xcb   :  { %v591_v2 = vmax.f32 %v585_v63, 0.0  ;;  %v590_v3 = vmax.f32 %v582_v1, 0.0 }
  0xcd   :  { %v595_v5 = vpack.c.bf16 %v591_v2, %v591_v2  ;;  %v594_v6 = vpack.c.bf16 %v590_v3, %v590_v3 }
  0xce   :  { %v567_v7 = vpop.f32.mrf.mxu2 }
  0xcf   :  { %600 = vst.msk [vmem:[#allocation2 + $0x8] sm:$0xf] %vm597_vm0, %v595_v5  ;;  %v568_v8 = vadd.f32 %v567_v7, %v549_v4  ;;  %v586_v9 = vpop.f32.mrf.mxu3 }
  0xd0   :  { %599 = vst.msk [vmem:[#allocation2 + $0x4] sm:$0xf] %vm597_vm0, %v594_v6 }
  0xd1   :  { %v587_v10 = vadd.f32 %v586_v9, %v568_v8 }
  0xd3   :  { %v592_v11 = vmax.f32 %v587_v10, 0.0 }
  0xd5   :  { %v596_v12 = vpack.c.bf16 %v592_v11, %v592_v11 }
  0xd7   :  { %601 = vst.msk [vmem:[#allocation2 + $0xc] sm:$0xf] %vm597_vm0, %v596_v12 }
  0xd8   :  { %614 = dma.vmem_to_hbm [thread:$0]  %s607_s2, 256, %s609_s24, [#allocation3], %s967_s25, %s967_s25, %s968_s26  }
  0xd9   :  { %964 = dma.done.wait [#allocation3], 256  }
  0xda   :  { %965 = vsyncadd [#allocation3], 4294967040 }
  0xdb   :  { %619 = vsyncpa [#allocation3], 1 }

</bundles_post_ra>
